<compile_context>
chip_gen: v7x
topology: tpu7x:2x2x1
jax: 0.10.0
libtpu: 0.0.40
codegen_flags: <defaults>
</compile_context>

<pallas_src>
import functools

import numpy as np
import jax
import jax.numpy as jnp
from jax import lax
from jax.experimental import pallas as pl
from jax.experimental.pallas import tpu as pltpu


# ----------------------------- small helpers --------------------------------


def _to_pair(v):
    if isinstance(v, (tuple, list)):
        assert len(v) == 2
        return int(v[0]), int(v[1])
    return int(v), int(v)


def _is_pow2(c):
    return c > 0 and (c & (c - 1)) == 0


def _idiv(x, c):
    """x // c for non-negative int32 x, cheap shift when c is a power of two."""
    if c == 1:
        return x
    if _is_pow2(c):
        return jnp.right_shift(x, int(c).bit_length() - 1)
    return x // jnp.int32(c)


def _imod(x, c):
    """x % c for non-negative int32 x, cheap mask when c is a power of two."""
    if c == 1:
        return jnp.zeros_like(x)
    if _is_pow2(c):
        return jnp.bitwise_and(x, jnp.int32(c - 1))
    return x % jnp.int32(c)


def _choose_row_tile(m, target=512):
    """Row tile: multiple of 8, divides m, <= target, >= 2 grid steps if possible."""
    if m % 8 != 0:
        # TODO(synk): odd row counts fall back to a single full block.
        return m
    q = m // 8
    cap = min(target // 8, q if q < 2 else q // 2)
    cap = max(cap, 1)
    best = 1
    for d in range(1, cap + 1):
        if q % d == 0:
            best = d
    return 8 * best


def _num_exact_parts(dtype):
    """How many bf16 terms are needed to represent this dtype exactly."""
    dtype = jnp.dtype(dtype)
    if dtype == jnp.dtype(jnp.bfloat16):
        return 1
    if dtype == jnp.dtype(jnp.float16):
        return 2
    return 3  # float32 (24-bit mantissa -> 3 x 8-bit bf16 chunks)


def _exact_bf16_parts(x_f32, n):
    """Decompose f32 x into n bf16 arrays whose (f32) sum equals x exactly (n=3)."""
    parts = []
    r = x_f32
    for i in range(n):
        p = r.astype(jnp.bfloat16)
        parts.append(p)
        if i + 1 < n:
            r = r - p.astype(jnp.float32)
    return parts


# ----------------------------- Pallas kernels --------------------------------


def _nearest_kernel(x_ref, o_ref, *, ph, pw, W, n_parts):
    """Nearest-neighbour upsample by (ph, pw).

    x_ref: (TM, W)           -- TM rows, each one input image row.
    o_ref: (TM, ph * W * pw) -- the ph upsampled output rows of each input row,
                                laid out [dh, w, dw] (== final NCHW memory order).
    """
    Wo = W * pw
    if pw == 1:
        row = x_ref[...].astype(o_ref.dtype)
    else:
        x = x_ref[...].astype(jnp.float32)                        # (TM, W)
        # Constant one-hot spread: output column c = w*pw + dw sources input w.
        src = lax.broadcasted_iota(jnp.int32, (W, Wo), 0)
        dst = lax.broadcasted_iota(jnp.int32, (W, Wo), 1)
        spread = (_idiv(dst, pw) == src).astype(jnp.float32).astype(jnp.bfloat16)
        acc = jnp.zeros((x.shape[0], Wo), jnp.float32)
        for p in _exact_bf16_parts(x, n_parts):
            # bf16 x {0,1} with f32 accumulation: exact copy of each part.
            acc = acc + jnp.dot(p, spread, preferred_element_type=jnp.float32)
        row = acc.astype(o_ref.dtype)

    for dh in range(ph):                                          # replicate ph rows
        o_ref[:, dh * Wo:(dh + 1) * Wo] = row


def _unpool_kernel(x_ref, idx_ref, o_ref, *, ph, pw, W, n_parts):
    """MaxUnpool2d for window-local (MaxPool2d-style) indices.

    x_ref:   (TM, W)            pooled values.
    idx_ref: (TM, W)  int32     flat indices into the (H*ph, W*pw) output plane.
    o_ref:   (TM, ph * W * pw)  unpooled rows in final memory order [dh, w, dw].
    """
    Wo = W * pw
    x = x_ref[...].astype(jnp.float32)                            # (TM, W)
    idx = idx_ref[...]                                            # (TM, W) int32

    # Window-local phase of every pooled element.
    dh_e = _imod(_idiv(idx, Wo), ph)                              # row offset in window
    dw_e = _imod(idx, pw)                                         # col offset in window

    parts = _exact_bf16_parts(x, n_parts)

    if pw > 1:
        # Constant one-hot scatter matrices (one per dw phase), built from iotas.
        src = lax.broadcasted_iota(jnp.int32, (W, Wo), 0)
        dst = lax.broadcasted_iota(jnp.int32, (W, Wo), 1)
        srcp = src * pw
        scatters = [
            (dst == srcp + dw).astype(jnp.float32).astype(jnp.bfloat16)
            for dw in range(pw)
        ]

    for dh in range(ph):
        dh_mask = dh_e == dh
        acc = jnp.zeros((x.shape[0], Wo), jnp.float32)
        if pw == 1:
            acc = acc + jnp.where(dh_mask, x, 0.0)
        else:
            for dw in range(pw):
                m = dh_mask & (dw_e == dw)
                for p in parts:
                    pm = jnp.where(m, p, jnp.zeros((), jnp.bfloat16))
                    acc = acc + jnp.dot(pm, scatters[dw],
                                        preferred_element_type=jnp.float32)
        o_ref[:, dh * Wo:(dh + 1) * Wo] = acc.astype(o_ref.dtype)


# ------------------------------ JAX wrapper -----------------------------------


def unpool2d(x, indices=None, pool_size=2, pad_size=None):
    """Unpool2d.forward. x: (N, C, H, W). Returns (N, C, H*ph, W*pw)."""
    del pad_size  # unused by the torch forward as well
    ph, pw = _to_pair(pool_size)
    if ph < 2 and pw < 2:
        return x

    N, C, H, W = map(int, x.shape)
    Wo = W * pw
    Ho = H * ph
    G = N * C * H                          # total input rows
    TM = _choose_row_tile(G)
    grid = (G // TM,)
    n_parts = _num_exact_parts(x.dtype)

    x2 = x.reshape(G, W)                   # free row-major reshape

    in_specs = [pl.BlockSpec((TM, W), lambda i: (i, 0))]
    out_spec = pl.BlockSpec((TM, ph * Wo), lambda i: (i, 0))
    cparams = pltpu.CompilerParams(
        dimension_semantics=("parallel",),
        vmem_limit_bytes=32 * 1024 * 1024,
    )
    out_shape = jax.ShapeDtypeStruct((G, ph * Wo), x.dtype)

    if indices is None:
        out2 = pl.pallas_call(
            functools.partial(_nearest_kernel, ph=ph, pw=pw, W=W, n_parts=n_parts),
            out_shape=out_shape,
            grid=grid,
            in_specs=in_specs,
            out_specs=out_spec,
            compiler_params=cparams,
        )(x2)
    else:
        idx2 = indices.reshape(G, W).astype(jnp.int32)
        out2 = pl.pallas_call(
            functools.partial(_unpool_kernel, ph=ph, pw=pw, W=W, n_parts=n_parts),
            out_shape=out_shape,
            grid=grid,
            in_specs=in_specs + [pl.BlockSpec((TM, W), lambda i: (i, 0))],
            out_specs=out_spec,
            compiler_params=cparams,
        )(x2, idx2)

    # (G, ph*Wo) row-major is exactly the (N, C, Ho, Wo) memory order -> free reshape.
    return out2.reshape(N, C, Ho, Wo)


class Unpool2d:
    """Thin module-like wrapper mirroring the PyTorch class."""

    def __init__(self, pool_size):
        self.pool_size = _to_pair(pool_size)

    def __call__(self, x, indices=None, pad_size=None):
        return unpool2d(x, indices=indices, pool_size=self.pool_size,
                        pad_size=pad_size)


# --------------------------------- main ----------------------------------------


if __name__ == "__main__":
    key = jax.random.PRNGKey(0)
    N, C, H, W = 2, 4, 16, 64
    ph, pw = 2, 2
    Ho, Wo = H * ph, W * pw

    kx, kh, kw = jax.random.split(key, 3)
    x = jax.random.normal(kx, (N, C, H, W), dtype=jnp.float32)

    # MaxPool2d-style indices: a winner inside each (ph, pw) window, flattened into
    # the (Ho, Wo) per-channel output plane.
    dh = jax.random.randint(kh, (N, C, H, W), 0, ph)
    dw = jax.random.randint(kw, (N, C, H, W), 0, pw)
    hh = jnp.arange(H).reshape(1, 1, H, 1)
    ww = jnp.arange(W).reshape(1, 1, 1, W)
    indices = ((hh * ph + dh) * Wo + (ww * pw + dw)).astype(jnp.int32)

    unpool = Unpool2d(pool_size=(ph, pw))

    # --- MaxUnpool2d path (indices given) ---
    out = unpool(x, indices=indices)
    out = jax.block_until_ready(out)
    assert out.shape == (N, C, Ho, Wo)

    def _scatter_row(zrow, irow, vrow):
        return zrow.at[irow].set(vrow)

    ref = jax.vmap(_scatter_row)(
        jnp.zeros((N * C, Ho * Wo), x.dtype),
        indices.reshape(N * C, H * W),
        x.reshape(N * C, H * W),
    ).reshape(N, C, Ho, Wo)
    np.testing.assert_allclose(np.asarray(out), np.asarray(ref),
                               rtol=1e-6, atol=1e-6)

    # --- interpolate path (indices=None, nearest upsample) ---
    up = unpool(x)
    up = jax.block_until_ready(up)
    ref_up = jnp.repeat(jnp.repeat(x, ph, axis=2), pw, axis=3)
    np.testing.assert_allclose(np.asarray(up), np.asarray(ref_up),
                               rtol=1e-6, atol=1e-6)

    # --- pool_size < 2 passthrough ---
    same = unpool2d(x, pool_size=1)
    assert same.shape == x.shape

    print("KERNEL_OK")
</pallas_src>

<mosaic_0001>
module attributes {stable_mosaic.version = 11 : i64} {
  func.func @_unpool_kernel(%arg0: i32, %arg1: memref<64x64xf32, #tpu.memory_space<vmem>>, %arg2: memref<64x64xi32, #tpu.memory_space<vmem>>, %arg3: memref<64x256xf32, #tpu.memory_space<vmem>>) attributes {dimension_semantics = [#tpu.dimension_semantics<parallel>], iteration_bounds = array<i64: 2>, scalar_prefetch = 0 : i64, scratch_operands = 0 : i64, tpu.core_type = #tpu.core_type<tc>, window_params = [{transform_indices = @transform_0, window_bounds = array<i64: 64, 64>}, {transform_indices = @transform_1, window_bounds = array<i64: 64, 64>}, {transform_indices = @transform_2, window_bounds = array<i64: 64, 256>}]} {
    %c0 = arith.constant 0 : index
    %c0_0 = arith.constant 0 : index
    %0 = vector.load %arg1[%c0, %c0_0] : memref<64x64xf32, #tpu.memory_space<vmem>>, vector<64x64xf32>
    %c0_1 = arith.constant 0 : index
    %c0_2 = arith.constant 0 : index
    %1 = vector.load %arg2[%c0_1, %c0_2] : memref<64x64xi32, #tpu.memory_space<vmem>>, vector<64x64xi32>
    %c7_i32 = arith.constant 7 : i32
    %2 = vector.broadcast %c7_i32 : i32 to vector<64x64xi32>
    %3 = arith.shrsi %1, %2 : vector<64x64xi32>
    %c1_i32 = arith.constant 1 : i32
    %4 = vector.broadcast %c1_i32 : i32 to vector<64x64xi32>
    %5 = arith.andi %3, %4 : vector<64x64xi32>
    %c1_i32_3 = arith.constant 1 : i32
    %6 = vector.broadcast %c1_i32_3 : i32 to vector<64x64xi32>
    %7 = arith.andi %1, %6 : vector<64x64xi32>
    %8 = arith.truncf %0 : vector<64x64xf32> to vector<64x64xbf16>
    %9 = arith.extf %8 : vector<64x64xbf16> to vector<64x64xf32>
    %10 = arith.subf %0, %9 : vector<64x64xf32>
    %11 = arith.truncf %10 : vector<64x64xf32> to vector<64x64xbf16>
    %12 = arith.extf %11 : vector<64x64xbf16> to vector<64x64xf32>
    %13 = arith.subf %10, %12 : vector<64x64xf32>
    %14 = arith.truncf %13 : vector<64x64xf32> to vector<64x64xbf16>
    %15 = tpu.iota {dimensions = array<i32: 0>} : vector<64x128xi32>
    %16 = tpu.iota {dimensions = array<i32: 1>} : vector<64x128xi32>
    %c2_i32 = arith.constant 2 : i32
    %17 = vector.broadcast %c2_i32 : i32 to vector<64x128xi32>
    %18 = arith.muli %15, %17 : vector<64x128xi32>
    %c0_i32 = arith.constant 0 : i32
    %19 = vector.broadcast %c0_i32 : i32 to vector<64x128xi32>
    %20 = arith.addi %18, %19 : vector<64x128xi32>
    %21 = arith.cmpi eq, %16, %20 : vector<64x128xi32>
    %22 = arith.extui %21 : vector<64x128xi1> to vector<64x128xi32>
    %23 = arith.sitofp %22 : vector<64x128xi32> to vector<64x128xf32>
    %24 = arith.truncf %23 : vector<64x128xf32> to vector<64x128xbf16>
    %c1_i32_4 = arith.constant 1 : i32
    %25 = vector.broadcast %c1_i32_4 : i32 to vector<64x128xi32>
    %26 = arith.addi %18, %25 : vector<64x128xi32>
    %27 = arith.cmpi eq, %16, %26 : vector<64x128xi32>
    %28 = arith.extui %27 : vector<64x128xi1> to vector<64x128xi32>
    %29 = arith.sitofp %28 : vector<64x128xi32> to vector<64x128xf32>
    %30 = arith.truncf %29 : vector<64x128xf32> to vector<64x128xbf16>
    %c0_i32_5 = arith.constant 0 : i32
    %31 = vector.broadcast %c0_i32_5 : i32 to vector<64x64xi32>
    %32 = arith.cmpi eq, %5, %31 : vector<64x64xi32>
    %cst = arith.constant 0.000000e+00 : f32
    %33 = vector.broadcast %cst : f32 to vector<64x128xf32>
    %c0_i32_6 = arith.constant 0 : i32
    %34 = vector.broadcast %c0_i32_6 : i32 to vector<64x64xi32>
    %35 = arith.cmpi eq, %7, %34 : vector<64x64xi32>
    %36 = arith.andi %32, %35 : vector<64x64xi1>
    %cst_7 = arith.constant 0.000000e+00 : bf16
    %37 = vector.broadcast %cst_7 : bf16 to vector<64x64xbf16>
    %38 = arith.select %36, %8, %37 : vector<64x64xi1>, vector<64x64xbf16>
    %cst_8 = arith.constant dense<0.000000e+00> : vector<64x128xf32>
    %39 = tpu.matmul %38, %24, %cst_8 {dimension_numbers = #tpu.dot_dimension_numbers<[1], [0], [0], [1], [0, 0, 1, 1], [], []>} : vector<64x64xbf16>, vector<64x128xbf16>, vector<64x128xf32> -> vector<64x128xf32>
    %40 = arith.addf %33, %39 : vector<64x128xf32>
    %cst_9 = arith.constant 0.000000e+00 : bf16
    %41 = vector.broadcast %cst_9 : bf16 to vector<64x64xbf16>
    %42 = arith.select %36, %11, %41 : vector<64x64xi1>, vector<64x64xbf16>
    %cst_10 = arith.constant dense<0.000000e+00> : vector<64x128xf32>
    %43 = tpu.matmul %42, %24, %cst_10 {dimension_numbers = #tpu.dot_dimension_numbers<[1], [0], [0], [1], [0, 0, 1, 1], [], []>} : vector<64x64xbf16>, vector<64x128xbf16>, vector<64x128xf32> -> vector<64x128xf32>
    %44 = arith.addf %40, %43 : vector<64x128xf32>
    %cst_11 = arith.constant 0.000000e+00 : bf16
    %45 = vector.broadcast %cst_11 : bf16 to vector<64x64xbf16>
    %46 = arith.select %36, %14, %45 : vector<64x64xi1>, vector<64x64xbf16>
    %cst_12 = arith.constant dense<0.000000e+00> : vector<64x128xf32>
    %47 = tpu.matmul %46, %24, %cst_12 {dimension_numbers = #tpu.dot_dimension_numbers<[1], [0], [0], [1], [0, 0, 1, 1], [], []>} : vector<64x64xbf16>, vector<64x128xbf16>, vector<64x128xf32> -> vector<64x128xf32>
    %48 = arith.addf %44, %47 : vector<64x128xf32>
    %c1_i32_13 = arith.constant 1 : i32
    %49 = vector.broadcast %c1_i32_13 : i32 to vector<64x64xi32>
    %50 = arith.cmpi eq, %7, %49 : vector<64x64xi32>
    %51 = arith.andi %32, %50 : vector<64x64xi1>
    %cst_14 = arith.constant 0.000000e+00 : bf16
    %52 = vector.broadcast %cst_14 : bf16 to vector<64x64xbf16>
    %53 = arith.select %51, %8, %52 : vector<64x64xi1>, vector<64x64xbf16>
    %cst_15 = arith.constant dense<0.000000e+00> : vector<64x128xf32>
    %54 = tpu.matmul %53, %30, %cst_15 {dimension_numbers = #tpu.dot_dimension_numbers<[1], [0], [0], [1], [0, 0, 1, 1], [], []>} : vector<64x64xbf16>, vector<64x128xbf16>, vector<64x128xf32> -> vector<64x128xf32>
    %55 = arith.addf %48, %54 : vector<64x128xf32>
    %cst_16 = arith.constant 0.000000e+00 : bf16
    %56 = vector.broadcast %cst_16 : bf16 to vector<64x64xbf16>
    %57 = arith.select %51, %11, %56 : vector<64x64xi1>, vector<64x64xbf16>
    %cst_17 = arith.constant dense<0.000000e+00> : vector<64x128xf32>
    %58 = tpu.matmul %57, %30, %cst_17 {dimension_numbers = #tpu.dot_dimension_numbers<[1], [0], [0], [1], [0, 0, 1, 1], [], []>} : vector<64x64xbf16>, vector<64x128xbf16>, vector<64x128xf32> -> vector<64x128xf32>
    %59 = arith.addf %55, %58 : vector<64x128xf32>
    %cst_18 = arith.constant 0.000000e+00 : bf16
    %60 = vector.broadcast %cst_18 : bf16 to vector<64x64xbf16>
    %61 = arith.select %51, %14, %60 : vector<64x64xi1>, vector<64x64xbf16>
    %cst_19 = arith.constant dense<0.000000e+00> : vector<64x128xf32>
    %62 = tpu.matmul %61, %30, %cst_19 {dimension_numbers = #tpu.dot_dimension_numbers<[1], [0], [0], [1], [0, 0, 1, 1], [], []>} : vector<64x64xbf16>, vector<64x128xbf16>, vector<64x128xf32> -> vector<64x128xf32>
    %63 = arith.addf %59, %62 : vector<64x128xf32>
    %c0_20 = arith.constant 0 : index
    %c0_21 = arith.constant 0 : index
    %64 = vector.load %arg3[%c0_20, %c0_21] : memref<64x256xf32, #tpu.memory_space<vmem>>, vector<64x128xf32>
    tpu.vector_store %arg3[%c0_20, %c0_21], %63 {strides = array<i32>} : memref<64x256xf32, #tpu.memory_space<vmem>>, vector<64x128xf32>,
    %c1_i32_22 = arith.constant 1 : i32
    %65 = vector.broadcast %c1_i32_22 : i32 to vector<64x64xi32>
    %66 = arith.cmpi eq, %5, %65 : vector<64x64xi32>
    %cst_23 = arith.constant 0.000000e+00 : f32
    %67 = vector.broadcast %cst_23 : f32 to vector<64x128xf32>
    %c0_i32_24 = arith.constant 0 : i32
    %68 = vector.broadcast %c0_i32_24 : i32 to vector<64x64xi32>
    %69 = arith.cmpi eq, %7, %68 : vector<64x64xi32>
    %70 = arith.andi %66, %69 : vector<64x64xi1>
    %cst_25 = arith.constant 0.000000e+00 : bf16
    %71 = vector.broadcast %cst_25 : bf16 to vector<64x64xbf16>
    %72 = arith.select %70, %8, %71 : vector<64x64xi1>, vector<64x64xbf16>
    %cst_26 = arith.constant dense<0.000000e+00> : vector<64x128xf32>
    %73 = tpu.matmul %72, %24, %cst_26 {dimension_numbers = #tpu.dot_dimension_numbers<[1], [0], [0], [1], [0, 0, 1, 1], [], []>} : vector<64x64xbf16>, vector<64x128xbf16>, vector<64x128xf32> -> vector<64x128xf32>
    %74 = arith.addf %67, %73 : vector<64x128xf32>
    %cst_27 = arith.constant 0.000000e+00 : bf16
    %75 = vector.broadcast %cst_27 : bf16 to vector<64x64xbf16>
    %76 = arith.select %70, %11, %75 : vector<64x64xi1>, vector<64x64xbf16>
    %cst_28 = arith.constant dense<0.000000e+00> : vector<64x128xf32>
    %77 = tpu.matmul %76, %24, %cst_28 {dimension_numbers = #tpu.dot_dimension_numbers<[1], [0], [0], [1], [0, 0, 1, 1], [], []>} : vector<64x64xbf16>, vector<64x128xbf16>, vector<64x128xf32> -> vector<64x128xf32>
    %78 = arith.addf %74, %77 : vector<64x128xf32>
    %cst_29 = arith.constant 0.000000e+00 : bf16
    %79 = vector.broadcast %cst_29 : bf16 to vector<64x64xbf16>
    %80 = arith.select %70, %14, %79 : vector<64x64xi1>, vector<64x64xbf16>
    %cst_30 = arith.constant dense<0.000000e+00> : vector<64x128xf32>
    %81 = tpu.matmul %80, %24, %cst_30 {dimension_numbers = #tpu.dot_dimension_numbers<[1], [0], [0], [1], [0, 0, 1, 1], [], []>} : vector<64x64xbf16>, vector<64x128xbf16>, vector<64x128xf32> -> vector<64x128xf32>
    %82 = arith.addf %78, %81 : vector<64x128xf32>
    %c1_i32_31 = arith.constant 1 : i32
    %83 = vector.broadcast %c1_i32_31 : i32 to vector<64x64xi32>
    %84 = arith.cmpi eq, %7, %83 : vector<64x64xi32>
    %85 = arith.andi %66, %84 : vector<64x64xi1>
    %cst_32 = arith.constant 0.000000e+00 : bf16
    %86 = vector.broadcast %cst_32 : bf16 to vector<64x64xbf16>
    %87 = arith.select %85, %8, %86 : vector<64x64xi1>, vector<64x64xbf16>
    %cst_33 = arith.constant dense<0.000000e+00> : vector<64x128xf32>
    %88 = tpu.matmul %87, %30, %cst_33 {dimension_numbers = #tpu.dot_dimension_numbers<[1], [0], [0], [1], [0, 0, 1, 1], [], []>} : vector<64x64xbf16>, vector<64x128xbf16>, vector<64x128xf32> -> vector<64x128xf32>
    %89 = arith.addf %82, %88 : vector<64x128xf32>
    %cst_34 = arith.constant 0.000000e+00 : bf16
    %90 = vector.broadcast %cst_34 : bf16 to vector<64x64xbf16>
    %91 = arith.select %85, %11, %90 : vector<64x64xi1>, vector<64x64xbf16>
    %cst_35 = arith.constant dense<0.000000e+00> : vector<64x128xf32>
    %92 = tpu.matmul %91, %30, %cst_35 {dimension_numbers = #tpu.dot_dimension_numbers<[1], [0], [0], [1], [0, 0, 1, 1], [], []>} : vector<64x64xbf16>, vector<64x128xbf16>, vector<64x128xf32> -> vector<64x128xf32>
    %93 = arith.addf %89, %92 : vector<64x128xf32>
    %cst_36 = arith.constant 0.000000e+00 : bf16
    %94 = vector.broadcast %cst_36 : bf16 to vector<64x64xbf16>
    %95 = arith.select %85, %14, %94 : vector<64x64xi1>, vector<64x64xbf16>
    %cst_37 = arith.constant dense<0.000000e+00> : vector<64x128xf32>
    %96 = tpu.matmul %95, %30, %cst_37 {dimension_numbers = #tpu.dot_dimension_numbers<[1], [0], [0], [1], [0, 0, 1, 1], [], []>} : vector<64x64xbf16>, vector<64x128xbf16>, vector<64x128xf32> -> vector<64x128xf32>
    %97 = arith.addf %93, %96 : vector<64x128xf32>
    %c0_38 = arith.constant 0 : index
    %c128 = arith.constant 128 : index
    %98 = vector.load %arg3[%c0_38, %c128] : memref<64x256xf32, #tpu.memory_space<vmem>>, vector<64x128xf32>
    tpu.vector_store %arg3[%c0_38, %c128], %97 {strides = array<i32>} : memref<64x256xf32, #tpu.memory_space<vmem>>, vector<64x128xf32>,
    return
  }
  func.func @transform_0(%arg0: i32) -> (i32, i32) {
    %c0_i32 = arith.constant 0 : i32
    %c0_i32_0 = arith.constant 0 : i32
    return %arg0, %c0_i32 : i32, i32
  }
  func.func @transform_1(%arg0: i32) -> (i32, i32) {
    %c0_i32 = arith.constant 0 : i32
    %c0_i32_0 = arith.constant 0 : i32
    return %arg0, %c0_i32 : i32, i32
  }
  func.func @transform_2(%arg0: i32) -> (i32, i32) {
    %c0_i32 = arith.constant 0 : i32
    %c0_i32_0 = arith.constant 0 : i32
    return %arg0, %c0_i32 : i32, i32
  }
}

</mosaic_0001>

<bundles_post_ra>
// kernel: tpu_custom_call.1
= control target key start
LH: loop header
LB: loop body
LE: loop exit
PB: predicated region body
PF: predicated region fallthrough
CT: control target
= control target key end

     0   :  { %7 = vsyncpa [#allocation3], 0  ;;  %s3472_s0 = inlined_call_operand.vmem [shape: f32[128,64], index: 0, kind: input, shape index: {}]   ;;  %s3473_s1 = inlined_call_operand.vmem [shape: s32[128,64], index: 1, kind: input, shape index: {}]   ;;  %s3474_s2 = inlined_call_operand.hbm [shape: f32[128,256], index: 2, kind: output, shape index: {}]  }
   0x1   :  { %9 = vsyncpa [#allocation3 + $0x1], 0  ;;  %s2227_s9 = smov 0   ;;  %s2229_s10 = smov 0  }
   0x2   :  { %s2231_s11 = smov 0   ;;  %s2233_s12 = smov 0  }
   0x3 LB: > { %s2248_s13 = sadd.s32 4294967295, %s2206_s12   ;;  %s1557_s14 = sadd.s32 4294967294, %s2206_s12   ;;  %s2206_s12 = sphi %s2233_s12, %s3724_s12   ;;  %s2202_s11 = sphi %s2231_s11, %s3723_s11   ;;  %s2198_s10 = sphi %s2229_s10, %s3722_s10   ;;  %s2194_s9 = sphi %s2227_s9, %s3721_s9  }
   0x4   : > { %s2252_s15 = sadd.s32 1, %s2206_s12   ;;  %s74_s16 = sadd.s32 1, %s2202_s11 }
   0x5   : > { %s71_s17 = ssub.s32 %s2206_s12, %s2252_s15  ;;  %p84_p0 = scmp.ne.s32.totalorder %s2202_s11, %s2198_s10 }
   0x6   : > { %p72_p1 = scmp.eq.s32.totalorder %s71_s17, 0  ;;  %p85_p2 = scmp.eq.s32.totalorder %s2248_s13, 1 }
   0x7   : > { %p90_p3 = scmp.ne.s32.totalorder %s2198_s10, %s2194_s9  ;;  %p91_p4 = scmp.eq.s32.totalorder %s1557_s14, 1 }
   0x8   : > { %s2263_s18 = scalar_select %p72_p1, %s2202_s11, %s74_s16  }
   0x9   : > { %p2265_p5 = por %p85_p2, %p84_p0  ;;  %p2269_p6 = por %p91_p4, %p90_p3 }
   0xa   : > { %p1560_p7 = scmp.ge.s32.totalorder %s2206_s12, 1  ;;  %p127_p8 = scmp.lt.s32.totalorder %s2206_s12, 3 }
   0xc   : > { %p128_p9 = pnand %p1560_p7, %p127_p8 }
   0xe   : > { %131 = sbr.rel (%p128_p9) target bundleno = 381 (0x17d), region = 28 }
  0x15   : > { %v252_v0 = vlaneseq  ;;  %s1562_s21 = sshll.u32 %s2248_s13, 3  ;;  %v2208_v25 = vmov 1.0|1.0   ;;  %v3532_v26 = vmov 0  ;;  %v3546_v49 = vmov 0  ;;  %s151_s29 = sand.u32 1, %s2198_s10  }
  0x16   : > { %p155_p10 = scmp.lt.s32.totalorder %s1562_s21, 15  ;;  %v3643_v51 = vmov 0  ;;  %s1561_s30 = sshll.u32 %s151_s29, 7 }
  0x17   : > { %v2276_v1 = vshrl.u32 %v252_v0, 7  ;;  %v2278_v2 = vand.u32 127, %v252_v0  ;;  %s3402_s3 = scalar_lea.vmem [#allocation2], %s1561_s30  ;;  %s1733_s4 = sshll.u32 %s2248_s13, 11 }
  0x18   : > { %s3726_s21 = smov (!%p155_p10, %s1562_s21), 15  ;;  %s1483_s5 = sshll.u32 %s3402_s3, 4  ;;  %s3424_s5 = int_to_ptr.vmem [resolvable:$true] %s1483_s5 }
  0x19   : > { %v2281_v3 = vadd.s32 8, %v2276_v1  ;;  %v263_v4 = vmul.u32 2, %v2276_v1  ;;  %v2285_v5 = vadd.s32 16, %v2276_v1  ;;  %v2288_v6 = vadd.s32 24, %v2276_v1  ;;  %s1563_s22 = sshll.u32 %s3726_s21, 3  ;;  %s3422_s8 = scalar_lea.hbm %s3474_s2, %s1733_s4 }
  0x1a   : > { %v2291_v7 = vadd.s32 32, %v2276_v1  ;;  %v2294_v8 = vadd.s32 40, %v2276_v1  ;;  %v2297_v9 = vadd.s32 48, %v2276_v1  ;;  %v2305_v12 = vadd.s32 56, %v2276_v1  ;;  %s2310_s25 = scalar_lea.vmem %s3472_s0, %s1563_s22  ;;  %s2315_s28 = scalar_lea.vmem %s3473_s1, %s1563_s22 }
  0x1b   : > { %v3510_v10 = vmul.u32 2, %v2281_v3  ;;  %vm271_vm0 = vcmp.eq.s32.totalorder %v2278_v2, %v263_v4  ;;  %v3507_v11 = vmul.u32 2, %v2285_v5  ;;  %v2320_v15 = vld [vmem:[%s2315_s28] sm:$0xff]  ;;  %v169_v18 = vld [vmem:[%s2310_s25 + $0x8] sm:$0xff]  ;;  %v2351_v24 = vld [vmem:[%s2315_s28 + $0x10] sm:$0xff]  ;;  %s3431_s13 = scalar_lea.sflag [#allocation3], %s151_s29 }
  0x1c   : > { %v3506_v13 = vmul.u32 2, %v2288_v6  ;;  %v3484_v14 = vmul.u32 2, %v2291_v7  ;;  %v168_v17 = vld [vmem:[%s2310_s25] sm:$0xff]  ;;  %v2332_v19 = vld [vmem:[%s2315_s28 + $0x8] sm:$0xff]  ;;  %v184_v23 = vshra.s32 %v2320_v15, 7  ;;  %v3509_v30 = vand.u32 1, %v2320_v15 }
  0x1d   : > { %vm272_vm1 = vcmp.eq.s32.totalorder %v2278_v2, %v3510_v10  ;;  %vm273_vm2 = vcmp.eq.s32.totalorder %v2278_v2, %v3507_v11  ;;  %v3481_v16 = vmul.u32 2, %v2294_v8  ;;  %v3480_v22 = vmul.u32 2, %v2297_v9  ;;  %v2399_v36 = vld [vmem:[%s2315_s28 + $0x18] sm:$0xff]  ;;  %v170_v42 = vld [vmem:[%s2310_s25 + $0x10] sm:$0xff]  ;;  %v172_v62 = vld [vmem:[%s2310_s25 + $0x20] sm:$0xff]  ;;  %s2144_s14 = scalar_lea.vmem %s3424_s5, 2048 }
  0x1e   : > { %vm2334_vm3 = vmpackc.low %vm272_vm1, %vm271_vm0  ;;  %vm274_vm4 = vcmp.eq.s32.totalorder %v2278_v2, %v3506_v13  ;;  %vm2344_vm5 = vcmp.eq.s32.totalorder %v2278_v2, %v3484_v14  ;;  %v3479_v28 = vmul.u32 2, %v2305_v12  ;;  %v185_v29 = vshra.s32 %v2332_v19, 7  ;;  %v171_v43 = vld [vmem:[%s2310_s25 + $0x18] sm:$0xff]  ;;  %v173_v63 = vld [vmem:[%s2310_s25 + $0x28] sm:$0xff]  ;;  %p2145_p11 = scmp.ne.s32.totalorder %s3424_s5, %s2144_s14  ;;  %s2209_s16 = smov [#allocation2]  }
  0x1f   : > { %1830 = vmatprep.subr.msk.bf16.mxu0 %vm2334_vm3, %v2208_v25  ;;  %1926 = vmatprep.subr.msk.bf16.mxu1 %vm2334_vm3, %v2208_v25  ;;  %vm2359_vm6 = vmpackc.low %vm274_vm4, %vm273_vm2  ;;  %vm2366_vm7 = vcmp.eq.s32.totalorder %v2278_v2, %v3481_v16  ;;  %v2379_v31 = vand.u32 1, %v184_v23  ;;  %v3508_v32 = vand.u32 1, %v2332_v19  ;;  %v2382_v33 = vpack.c.bf16 %v169_v18, %v168_v17  ;;  %v174_v41 = vld [vmem:[%s2310_s25 + $0x30] sm:$0xff]  ;;  %s2148_s17 = sshll.u32 %s2209_s16, 4  ;;  %s2149_s17 = int_to_ptr.vmem [resolvable:$false] %s2148_s17 }
  0x20   : > { %v3533_v26 = vsel %vm2359_vm6, 4294967295, %v3532_v26  ;;  %1831 = vmatpush3.bf16.msk.msra.mxu0 %vm2334_vm3, %v2208_v25  ;;  %1927 = vmatpush3.bf16.msk.msra.mxu1 %vm2334_vm3, %v2208_v25  ;;  %v2390_v34 = vand.u32 1, %v185_v29  ;;  %vm2394_vm8 = vcmp.eq.s32.totalorder %v3509_v30, 0  ;;  %v186_v37 = vshra.s32 %v2351_v24, 7  ;;  %vm2406_vm9 = vmpackc.low %vm2366_vm7, %vm2344_vm5  ;;  %v2554_v29 = vld [vmem:[%s2315_s28 + $0x28] sm:$0xff]  ;;  %p2146_p12 = pnand %p2145_p11, %p2265_p5  ;;  %s2150_s21 = scalar_lea.vmem %s2149_s17, 4096 }
  0x21   : > { %1832 = vmatprep.subr.msk.bf16.mxu0 %vm2359_vm6, %v2208_v25  ;;  %1928 = vmatprep.subr.msk.bf16.mxu1 %vm2359_vm6, %v2208_v25  ;;  %v212_v39 = vunpack.c.l.bf16 %v2382_v33  ;;  %v213_v40 = vunpack.c.h.bf16 %v2382_v33  ;;  %vm3489_vm10 = vcmp.eq.s32.totalorder %v2379_v31, 0  ;;  %vm2415_vm11 = vcmp.eq.s32.totalorder %v3508_v32, 0  ;;  %p2151_p0 = scmp.lt.s32.totalorder %s3424_s5, %s2149_s17  ;;  %p2152_p1 = scmp.lt.s32.totalorder %s2150_s21, %s2144_s14 }
  0x22   : > { %vm2424_vm12 = vcmp.eq.s32.totalorder %v2278_v2, %v3480_v22  ;;  %vm2431_vm13 = vcmp.eq.s32.totalorder %v2278_v2, %v3479_v28  ;;  %vm3486_vm14 = vcmp.eq.s32.totalorder %v2390_v34, 0  ;;  %vm351_vm15 = vmand %vm3489_vm10, %vm2394_vm8  ;;  %v187_v48 = vshra.s32 %v2399_v36, 7  ;;  %p2147_p13 = pneg %p2146_p12 }
  0x23   : > { %v2446_v46 = vsub.f32 %v168_v17, %v212_v39  ;;  %v2448_v47 = vsub.f32 %v169_v18, %v213_v40  ;;  %vm352_vm0 = vmand %vm3486_vm14, %vm2415_vm11  ;;  %vm3490_vm2 = vcmask 523264   ;;  %vm3476_vm4 = vcmp.eq.s32.totalorder %v2379_v31, 1  ;;  %v2531_v18 = vld [vmem:[%s2315_s28 + $0x20] sm:$0xff]  ;;  %p2153_p2 = por %p2152_p1, %p2151_p0 }
  0x24   : > { %1833 = vmatpush3.bf16.msk.msra.mxu0 %vm2359_vm6, %v2208_v25  ;;  %1929 = vmatpush3.bf16.msk.msra.mxu1 %vm2359_vm6, %v2208_v25  ;;  %vm2461_vm1 = vmpackc.low %vm352_vm0, %vm351_vm15  ;;  %v2466_v50 = vpack.c.bf16 %v171_v43, %v170_v42  ;;  %vm3475_vm7 = vcmp.eq.s32.totalorder %v2390_v34, 1  ;;  %v2481_v53 = vand.u32 1, %v186_v37  ;;  %v3491_v54 = vand.u32 1, %v2351_v24 }
  0x25   : > { %1834 = vmatprep.subr.msk.bf16.mxu0 %vm2406_vm9, %v2208_v25  ;;  %1930 = vmatprep.subr.msk.bf16.mxu1 %vm2406_vm9, %v2208_v25  ;;  %v3547_v49 = vsel %vm2461_vm1, 4294967295, %v3546_v49  ;;  %vm2472_vm5 = vmpackc.low %vm2431_vm13, %vm2424_vm12  ;;  %v2478_v52 = vpack.c.bf16 %v2448_v47, %v2446_v46  ;;  %v2484_v55 = vand.u32 1, %v187_v48  ;;  %v3488_v56 = vand.u32 1, %v2399_v36  ;;  %p2154_p3 = pnand %p2153_p2, %p2147_p13 }
  0x26   : > { %v214_v57 = vunpack.c.l.bf16 %v2466_v50  ;;  %v215_v58 = vunpack.c.h.bf16 %v2466_v50  ;;  %vm918_vm12 = vmand %vm3476_vm4, %vm2394_vm8  ;;  %vm3477_vm15 = vcmp.eq.s32.totalorder %v2481_v53, 0  ;;  %vm2526_vm0 = vcmp.eq.s32.totalorder %v3491_v54, 0 }
  0x27   : > { %v367_v59 = vsel %vm2461_vm1, %v2478_v52, 0  ;;  %vm919_vm13 = vmand %vm3475_vm7, %vm2415_vm11  ;;  %vm3478_vm11 = vcmp.eq.s32.totalorder %v2484_v55, 0  ;;  %v2556_v35 = vpack.c.bf16 %v173_v63, %v172_v62  ;;  %v188_v37 = vshra.s32 %v2531_v18, 7 }
  0x28   : > { %1835 = vmatpush3.bf16.msk.msra.mxu0 %vm2406_vm9, %v2208_v25  ;;  %1931 = vmatpush3.bf16.msk.msra.mxu1 %vm2406_vm9, %v2208_v25  ;;  %v2512_v60 = vsub.f32 %v170_v42, %v214_v57  ;;  %v2514_v61 = vsub.f32 %v171_v43, %v215_v58  ;;  %vm2519_vm8 = vmpackc.low %vm919_vm13, %vm918_vm12  ;;  %vm2539_vm12 = vcmp.eq.s32.totalorder %v3488_v56, 0  ;;  %v189_v40 = vshra.s32 %v2554_v29, 7  ;;  %v175_v42 = vld [vmem:[%s2310_s25 + $0x38] sm:$0xff]  ;;  %v2592_v57 = vld [vmem:[%s2315_s28 + $0x30] sm:$0xff] }
  0x29   : > { %1836 = vmatprep.subr.msk.bf16.mxu0 %vm2472_vm5, %v2208_v25  ;;  %1932 = vmatprep.subr.msk.bf16.mxu1 %vm2472_vm5, %v2208_v25  ;;  %v934_v21 = vsel %vm2519_vm8, %v2478_v52, 0  ;;  %vm353_vm13 = vmand %vm3477_vm15, %vm2526_vm0  ;;  %vm3482_vm15 = vcmp.eq.s32.totalorder %v2481_v53, 1  ;;  %v216_v44 = vunpack.c.l.bf16 %v2556_v35  ;;  %v217_v45 = vunpack.c.h.bf16 %v2556_v35 }
  0x2a   : > { %1838 = vmatprep.mubr.msk.bf16.mxu0 %vm3490_vm2, %v367_v59  ;;  %v2551_v27 = vpack.c.bf16 %v2514_v61, %v2512_v60  ;;  %1934 = vmatprep.mubr.msk.bf16.mxu1 %vm3490_vm2, %v934_v21  ;;  %vm354_vm7 = vmand %vm3478_vm11, %vm2539_vm12  ;;  %v2589_v48 = vand.u32 1, %v188_v37  ;;  %v3483_v58 = vand.u32 1, %v2531_v18  ;;  %v2599_v59 = vld [vmem:[%s2315_s28 + $0x38] sm:$0xff]  ;;  %v2601_v21 = vpack.c.bf16 %v175_v42, %v174_v41 }
  0x2b   : > { %vm2574_vm4 = vmpackc.low %vm354_vm7, %vm353_vm13  ;;  %vm3485_vm7 = vcmp.eq.s32.totalorder %v2484_v55, 1  ;;  %v2610_v37 = vand.u32 1, %v189_v40  ;;  %v2617_v28 = vsub.f32 %v172_v62, %v216_v44  ;;  %v2619_v22 = vsub.f32 %v173_v63, %v217_v45 }
  0x2c   : > { %1837 = vmatpush3.bf16.msk.msra.mxu0 %vm2472_vm5, %v2208_v25  ;;  %1933 = vmatpush3.bf16.msk.msra.mxu1 %vm2472_vm5, %v2208_v25  ;;  %3556 = vst [vmem:[#allocation5_spill] sm:$0xff] %v2551_v27  ;;  %v368_v43 = vsel %vm2574_vm4, %v2551_v27, 0  ;;  %vm920_vm13 = vmand %vm3482_vm15, %vm2526_vm0  ;;  %v190_v17 = vshra.s32 %v2592_v57, 7  ;;  %v3559_v16 = vmov 0  ;;  %vm3492_vm15 = vcmp.eq.s32.totalorder %v2589_v48, 0 }
  0x2d   : > { %1846 = vmatprep.subr.msk.bf16.mxu0 %vm2334_vm3, %v2208_v25  ;;  %1942 = vmatprep.subr.msk.bf16.mxu1 %vm2334_vm3, %v2208_v25  ;;  %vm921_vm11 = vmand %vm3485_vm7, %vm2539_vm12  ;;  %v191_v40 = vshra.s32 %v2599_v59, 7  ;;  %vm2636_vm12 = vcmp.eq.s32.totalorder %v3483_v58, 0  ;;  %v218_v63 = vunpack.c.l.bf16 %v2601_v21  ;;  %v219_v44 = vunpack.c.h.bf16 %v2601_v21 }
  0x2e   : > { %vm2622_vm0 = vmpackc.low %vm921_vm11, %vm920_vm13  ;;  %vm3493_vm11 = vcmp.eq.s32.totalorder %v2610_v37, 0  ;;  %v2658_v58 = vpack.c.bf16 %v2619_v22, %v2617_v28  ;;  %v3504_v14 = vand.u32 1, %v2592_v57  ;;  %vm3500_vm14 = vcmp.eq.s32.totalorder %v2589_v48, 1 }
  0x2f   : > { %1839 = vmatmul.mubr.msk.bf16.vlgmr.msra.gmra.mrb[0].mxu0 %vm3490_vm2, %v368_v43  ;;  %v3487_v43 = vand.u32 1, %v2554_v29  ;;  %v3560_v16 = vsel %vm2622_vm0, 4294967295, %v3559_v16  ;;  %v935_v23 = vsel %vm2622_vm0, %v2551_v27, 0  ;;  %vm355_vm7 = vmand %vm3492_vm15, %vm2636_vm12  ;;  %v3502_v56 = vand.u32 1, %v2599_v59 }
  0x30   : > { %1847 = vmatpush3.bf16.msk.msra.mxu0 %vm2334_vm3, %v2208_v25  ;;  %1935 = vmatmul.mubr.msk.bf16.vlgmr.msra.gmra.mrb[0].mxu1 %vm3490_vm2, %v935_v23  ;;  %v2660_v23 = vand.u32 1, %v190_v17  ;;  %v2679_v17 = vsub.f32 %v174_v41, %v218_v63  ;;  %v2681_v54 = vsub.f32 %v175_v42, %v219_v44  ;;  %vm3569_vm2 = vcmask 523264  }
  0x31   : > { %1848 = vmatprep.subr.msk.bf16.mxu0 %vm2359_vm6, %v2208_v25  ;;  %vm2646_vm13 = vcmp.eq.s32.totalorder %v3487_v43, 0  ;;  %1943 = vmatpush3.bf16.msk.msra.mxu1 %vm2334_vm3, %v2208_v25  ;;  %v2671_v43 = vand.u32 1, %v191_v40  ;;  %v3565_v40 = vmov 0  ;;  %v930_v42 = vsel %vm2519_vm8, %v2382_v33, 0 }
  0x32   : > { %1944 = vmatprep.subr.msk.bf16.mxu1 %vm2359_vm6, %v2208_v25  ;;  %vm356_vm10 = vmand %vm3493_vm11, %vm2646_vm13  ;;  %vm2706_vm11 = vcmp.eq.s32.totalorder %v3504_v14, 0  ;;  %v2731_v44 = vpack.c.bf16 %v2681_v54, %v2679_v17  ;;  %v3578_v14 = vmov 0  ;;  %v232_v62 = vunpack.c.l.bf16 %v2478_v52 }
  0x33   : > { %vm2686_vm15 = vmpackc.low %vm356_vm10, %vm355_vm7  ;;  %vm3501_vm7 = vcmp.eq.s32.totalorder %v2660_v23, 0  ;;  %v233_v13 = vunpack.c.h.bf16 %v2478_v52  ;;  %v235_v10 = vunpack.c.h.bf16 %v2551_v27  ;;  %v3612_v0 = vand.u32 1, %v2399_v36 }
  0x34   : > { %1849 = vmatpush3.bf16.msk.msra.mxu0 %vm2359_vm6, %v2208_v25  ;;  %v3566_v40 = vsel %vm2686_vm15, 4294967295, %v3565_v40  ;;  %v369_v41 = vsel %vm2686_vm15, %v2658_v58, 0  ;;  %vm922_vm10 = vmand %vm3500_vm14, %vm2636_vm12  ;;  %vm3503_vm15 = vcmp.eq.s32.totalorder %v2671_v43, 0  ;;  %vm2718_vm12 = vcmp.eq.s32.totalorder %v3502_v56, 0 }
  0x35   : > { %1850 = vmatprep.subr.msk.bf16.mxu0 %vm2406_vm9, %v2208_v25  ;;  %1945 = vmatpush3.bf16.msk.msra.mxu1 %vm2359_vm6, %v2208_v25  ;;  %vm3570_vm6 = vcmp.eq.s32.totalorder %v2610_v37, 1  ;;  %v240_v32 = vsub.f32 %v2446_v46, %v232_v62  ;;  %v241_v30 = vsub.f32 %v2448_v47, %v233_v13  ;;  %v299_v47 = vadd.s32 1, %v263_v4 }
  0x36   : > { %1842 = vmatprep.mubr.msk.bf16.mxu0 %vm3569_vm2, %v369_v41  ;;  %vm923_vm0 = vmand %vm3570_vm6, %vm2646_vm13  ;;  %1946 = vmatprep.subr.msk.bf16.mxu1 %vm2406_vm9, %v2208_v25  ;;  %vm3514_vm2 = vcmp.eq.s32.totalorder %v2660_v23, 1  ;;  %v3576_v41 = vmov 0  ;;  %v236_v62 = vunpack.c.l.bf16 %v2658_v58  ;;  %v243_v4 = vsub.f32 %v2514_v61, %v235_v10 }
  0x37   : > { %vm2725_vm14 = vmpackc.low %vm923_vm0, %vm922_vm10  ;;  %vm3575_vm0 = vcmask 523264   ;;  %vm3513_vm10 = vcmp.eq.s32.totalorder %v2671_v43, 1  ;;  %v2824_v46 = vpack.c.bf16 %v241_v30, %v240_v32  ;;  %v3601_v61 = vmul.u32 2, %v2288_v6 }
  0x38   : > { %1851 = vmatpush3.bf16.msk.msra.mxu0 %vm2406_vm9, %v2208_v25  ;;  %v936_v45 = vsel %vm2725_vm14, %v2658_v58, 0  ;;  %vm357_vm6 = vmand %vm3501_vm7, %vm2706_vm11  ;;  %v932_v13 = vsel %vm2725_vm14, %v2556_v35, 0  ;;  %v244_v32 = vsub.f32 %v2617_v28, %v236_v62  ;;  %v238_v6 = vunpack.c.l.bf16 %v2731_v44 }
  0x39   : > { %1852 = vmatprep.subr.msk.bf16.mxu0 %vm2472_vm5, %v2208_v25  ;;  %1938 = vmatprep.mubr.msk.bf16.mxu1 %vm3575_vm0, %v936_v45  ;;  %vm358_vm13 = vmand %vm3503_vm15, %vm2718_vm12  ;;  %v363_v45 = vsel %vm2461_vm1, %v2382_v33, 0  ;;  %v239_v62 = vunpack.c.h.bf16 %v2731_v44  ;;  %v3621_v36 = vmul.u32 2, %v2294_v8  ;;  %v3648_v63 = vand.u32 1, %v2531_v18 }
  0x3a   : > { %1947 = vmatpush3.bf16.msk.msra.mxu1 %vm2406_vm9, %v2208_v25  ;;  %vm2756_vm7 = vmpackc.low %vm358_vm13, %vm357_vm6  ;;  %v3661_v18 = vmov 0 }
  0x3b   : > { %v3577_v41 = vsel %vm2756_vm7, 4294967295, %v3576_v41  ;;  %1948 = vmatprep.subr.msk.bf16.mxu1 %vm2472_vm5, %v2208_v25  ;;  %v370_v56 = vsel %vm2756_vm7, %v2731_v44, 0  ;;  %vm924_vm6 = vmand %vm3514_vm2, %vm2706_vm11  ;;  %v247_v38 = vsub.f32 %v2681_v54, %v239_v62 }
  0x3c   : > { %1853 = vmatpush3.bf16.msk.msra.mxu0 %vm2472_vm5, %v2208_v25  ;;  %vm925_vm13 = vmand %vm3513_vm10, %vm2718_vm12  ;;  %vm3596_vm10 = vcmp.eq.s32.totalorder %v2379_v31, 0 }
  0x3d   : > { %1862 = vmatprep.subr.msk.bf16.mxu0 %vm2334_vm3, %v2208_v25  ;;  %1843 = vmatmul.mubr.msk.bf16.gmra.mrb[4].mxu0 %vm3575_vm0, %v370_v56  ;;  %vm2778_vm15 = vmpackc.low %vm925_vm13, %vm924_vm6  ;;  %vm3584_vm6 = vnez %v3560_v16  ;;  %v3639_v16 = vmul.u32 2, %v2305_v12 }
  0x3e   : > { %v3579_v14 = vsel %vm2778_vm15, 4294967295, %v3578_v14  ;;  %1949 = vmatpush3.bf16.msk.msra.mxu1 %vm2472_vm5, %v2208_v25  ;;  %vm3580_vm1 = vmmov %vm3575_vm0  ;;  %v937_v56 = vsel %vm2778_vm15, %v2731_v44, 0  ;;  %v933_v28 = vsel %vm2778_vm15, %v2601_v21, 0 }
  0x3f   : > { %1854 = vmatprep.mubr.msk.bf16.mxu0 %vm3580_vm1, %v363_v45  ;;  %1958 = vmatprep.subr.msk.bf16.mxu1 %vm2334_vm3, %v2208_v25  ;;  %vm3581_vm11 = vmmov %vm3575_vm0  ;;  %v364_v45 = vsel %vm2574_vm4, %v2466_v50, 0  ;;  %vm3583_vm1 = vnez %v3566_v40  ;;  %v3638_v40 = vmul.u32 2, %v2297_v9 }
  0x40   : > { %1939 = vmatmul.mubr.msk.bf16.gmra.mrb[4].mxu1 %vm3581_vm11, %v937_v56  ;;  %vm3582_vm12 = vmmov %vm3575_vm0  ;;  %v365_v11 = vsel %vm3583_vm1, %v2556_v35, 0  ;;  %v931_v56 = vsel %vm3584_vm6, %v2466_v50, 0  ;;  %vm3586_vm11 = vnez %v3533_v26  ;;  %v3603_v26 = vmov 0 }
  0x41   : > { %1950 = vmatprep.mubr.msk.bf16.mxu1 %vm3582_vm12, %v930_v42  ;;  %v234_v42 = vunpack.c.l.bf16 %v2551_v27  ;;  %vm3585_vm13 = vmmov %vm3575_vm0  ;;  %v305_v20 = vadd.s32 1, %v3638_v40 }
  0x42   : > { %vm3587_vm12 = vmmov %vm3575_vm0 }
  0x43   : > { %v242_v1 = vsub.f32 %v2512_v60, %v234_v42  ;;  %v302_v42 = vadd.s32 1, %v3601_v61 }
  0x45   : > { %1855 = vmatmul.mubr.msk.bf16.vlgmr.msra.gmra.mrb[0].mxu0 %vm3575_vm0, %v364_v45  ;;  %v237_v45 = vunpack.c.h.bf16 %v2658_v58 }
  0x46   : > { %1863 = vmatpush3.bf16.msk.msra.mxu0 %vm2334_vm3, %v2208_v25  ;;  %1858 = vmatprep.mubr.msk.bf16.mxu0 %vm3585_vm13, %v365_v11  ;;  %v3588_v11 = vmul.u32 2, %v2281_v3  ;;  %v366_v3 = vsel %vm2756_vm7, %v2601_v21, 0  ;;  %vm3599_vm7 = vmmov %vm3575_vm0 }
  0x47   : > { %1864 = vmatprep.subr.msk.bf16.mxu0 %vm3586_vm11, %v2208_v25  ;;  %v245_v60 = vsub.f32 %v2619_v22, %v237_v45  ;;  %v3600_v22 = vmul.u32 2, %v2285_v5  ;;  %v1092_v5 = vsel %vm2519_vm8, %v2824_v46, 0  ;;  %v3606_v45 = vmov 0 }
  0x48   : > { %1951 = vmatmul.mubr.msk.bf16.vlgmr.msra.gmra.mrb[0].mxu1 %vm3587_vm12, %v931_v56  ;;  %v300_v27 = vadd.s32 1, %v3588_v11  ;;  %v3589_v56 = vand.u32 1, %v2320_v15  ;;  %v3592_v15 = vand.u32 1, %v2332_v19  ;;  %vm3595_vm12 = vnez %v3547_v49 }
  0x49   : > { %1959 = vmatpush3.bf16.msk.msra.mxu1 %vm2334_vm3, %v2208_v25  ;;  %1954 = vmatprep.mubr.msk.bf16.mxu1 %vm3575_vm0, %v932_v13  ;;  %v526_v10 = vsel %vm3595_vm12, %v2824_v46, 0  ;;  %v301_v49 = vadd.s32 1, %v3600_v22  ;;  %v2896_v13 = vpack.c.bf16 %v243_v4, %v242_v1  ;;  %v3608_v11 = vand.u32 1, %v2351_v24 }
  0x4a   : > { %vm2838_vm13 = vcmp.eq.s32.totalorder %v3589_v56, 1  ;;  %1960 = vmatprep.subr.msk.bf16.mxu1 %vm3586_vm11, %v2208_v25  ;;  %1865 = vmatpush3.bf16.msk.msra.mxu0 %vm3586_vm11, %v2208_v25  ;;  %vm2855_vm3 = vcmp.eq.s32.totalorder %v3592_v15, 1  ;;  %vm3611_vm8 = vcmask 523264   ;;  %vm2929_vm12 = vcmp.eq.s32.totalorder %v3612_v0, 1 }
  0x4b   : > { %1866 = vmatprep.subr.msk.bf16.mxu0 %vm2406_vm9, %v2208_v25  ;;  %vm2872_vm2 = vmand %vm3596_vm10, %vm2838_vm13  ;;  %vm3602_vm10 = vcmp.eq.s32.totalorder %v2390_v34, 0  ;;  %vm3617_vm15 = vcmp.eq.s32.totalorder %v2278_v2, %v300_v27  ;;  %v3618_v24 = vmov 0  ;;  %v2942_v30 = vpack.c.bf16 %v245_v60, %v244_v32 }
  0x4c   : > { %vm2892_vm0 = vmand %vm3602_vm10, %vm2855_vm3  ;;  %vm2919_vm10 = vcmp.eq.s32.totalorder %v3608_v11, 1  ;;  %v3620_v1 = vmul.u32 2, %v2291_v7  ;;  %v527_v7 = vsel %vm2574_vm4, %v2896_v13, 0  ;;  %v3668_v19 = vmov 0 }
  0x4d   : > { %1961 = vmatpush3.bf16.msk.msra.mxu1 %vm3586_vm11, %v2208_v25  ;;  %1859 = vmatmul.mubr.msk.bf16.gmra.mrb[4].mxu0 %vm3599_vm7, %v366_v3  ;;  %v3604_v26 = vsel %vm2892_vm0, 4294967295, %v3603_v26  ;;  %vm3605_vm7 = vcmp.eq.s32.totalorder %v2379_v31, 1  ;;  %v304_v3 = vadd.s32 1, %v3621_v36  ;;  %vm310_vm0 = vcmp.eq.s32.totalorder %v2278_v2, %v302_v42 }
  0x4e   : > { %1962 = vmatprep.subr.msk.bf16.mxu1 %vm2406_vm9, %v2208_v25  ;;  %1867 = vmatpush3.bf16.msk.msra.mxu0 %vm2406_vm9, %v2208_v25  ;;  %vm2913_vm11 = vmand %vm3605_vm7, %vm2838_vm13  ;;  %vm3616_vm7 = vcmp.eq.s32.totalorder %v2278_v2, %v299_v47  ;;  %v303_v4 = vadd.s32 1, %v3620_v1  ;;  %v3623_v47 = vmov 0  ;;  %v528_v54 = vsel %vm3583_vm1, %v2942_v30, 0 }
  0x4f   : > { %v3607_v45 = vsel %vm2913_vm11, 4294967295, %v3606_v45  ;;  %1868 = vmatprep.subr.msk.bf16.mxu0 %vm2472_vm5, %v2208_v25  ;;  %1870 = vmatprep.mubr.msk.bf16.mxu0 %vm3611_vm8, %v526_v10  ;;  %vm3615_vm13 = vmmov %vm3611_vm8  ;;  %vm3622_vm8 = vcmp.eq.s32.totalorder %v2390_v34, 1  ;;  %v246_v34 = vsub.f32 %v2679_v17, %v238_v6  ;;  %v1093_v17 = vsel %vm3584_vm6, %v2896_v13, 0 }
  0x50   : > { %1955 = vmatmul.mubr.msk.bf16.gmra.mrb[4].mxu1 %vm3615_vm13, %v933_v28  ;;  %vm2938_vm11 = vmpackc.low %vm3617_vm15, %vm3616_vm7  ;;  %vm3625_vm15 = vcmask 523264   ;;  %vm309_vm7 = vcmp.eq.s32.totalorder %v2278_v2, %v301_v49  ;;  %vm3637_vm1 = vcmask 523264   ;;  %v306_v10 = vadd.s32 1, %v3639_v16 }
  0x51   : > { %v3619_v24 = vsel %vm2938_vm11, 4294967295, %v3618_v24  ;;  %vm2952_vm13 = vmand %vm3622_vm8, %vm2855_vm3  ;;  %1963 = vmatpush3.bf16.msk.msra.mxu1 %vm2406_vm9, %v2208_v25  ;;  %1966 = vmatprep.mubr.msk.bf16.mxu1 %vm3625_vm15, %v1092_v5  ;;  %vm3626_vm3 = vcmp.eq.s32.totalorder %v2481_v53, 0  ;;  %vm3629_vm9 = vcmp.eq.s32.totalorder %v2484_v55, 0  ;;  %vm3640_vm6 = vcmp.eq.s32.totalorder %v2484_v55, 1 }
  0x52   : > { %v3624_v47 = vsel %vm2952_vm13, 4294967295, %v3623_v47  ;;  %vm2969_vm8 = vmand %vm3626_vm3, %vm2919_vm10  ;;  %1964 = vmatprep.subr.msk.bf16.mxu1 %vm2472_vm5, %v2208_v25  ;;  %1869 = vmatpush3.bf16.msk.msra.mxu0 %vm2472_vm5, %v2208_v25  ;;  %vm311_vm3 = vcmp.eq.s32.totalorder %v2278_v2, %v303_v4  ;;  %vm312_vm13 = vcmp.eq.s32.totalorder %v2278_v2, %v304_v3  ;;  %v1094_v9 = vsel %vm2725_vm14, %v2942_v30, 0 }
  0x53   : > { %vm2985_vm4 = vmand %vm3629_vm9, %vm2929_vm12  ;;  %1878 = vmatprep.subr.msk.bf16.mxu0 %vm2938_vm11, %v2208_v25  ;;  %vm3634_vm9 = vcmp.eq.s32.totalorder %v2481_v53, 1  ;;  %v3037_v12 = vpack.c.bf16 %v247_v38, %v246_v34  ;;  %v3655_v28 = vand.u32 1, %v2554_v29 }
  0x54   : > { %vm2992_vm15 = vmpackc.low %vm310_vm0, %vm309_vm7  ;;  %vm3061_vm7 = vcmp.eq.s32.totalorder %v3648_v63, 1 }
  0x55   : > { %vm3008_vm0 = vmand %vm3634_vm9, %vm2919_vm10  ;;  %1965 = vmatpush3.bf16.msk.msra.mxu1 %vm2472_vm5, %v2208_v25  ;;  %1871 = vmatmul.mubr.msk.bf16.vlgmr.msra.gmra.mrb[0].mxu0 %vm3637_vm1, %v527_v7 }
  0x56   : > { %vm3024_vm10 = vmand %vm3640_vm6, %vm2929_vm12  ;;  %1974 = vmatprep.subr.msk.bf16.mxu1 %vm2938_vm11, %v2208_v25  ;;  %1879 = vmatpush3.bf16.msk.msra.mxu0 %vm2938_vm11, %v2208_v25  ;;  %vm314_vm6 = vcmp.eq.s32.totalorder %v2278_v2, %v306_v10 }
  0x57   : > { %vm3043_vm5 = vmpackc.low %vm2985_vm4, %vm2969_vm8  ;;  %1880 = vmatprep.subr.msk.bf16.mxu0 %vm2992_vm15, %v2208_v25  ;;  %vm3652_vm4 = vnez %v3604_v26  ;;  %v3674_v26 = vand.u32 1, %v2592_v57  ;;  %v3688_v57 = vmov 0 }
  0x58   : > { %v3644_v51 = vsel %vm3043_vm5, 4294967295, %v3643_v51  ;;  %vm3645_vm12 = vmmov %vm3637_vm1 }
  0x59   : > { %1874 = vmatprep.mubr.msk.bf16.mxu0 %vm3645_vm12, %v528_v54  ;;  %vm3055_vm14 = vmpackc.low %vm312_vm13, %vm311_vm3  ;;  %vm3076_vm13 = vcmp.eq.s32.totalorder %v3655_v28, 1  ;;  %vm3660_vm12 = vnez %v3624_v47 }
  0x5a   : > { %vm3651_vm8 = vmmov %vm3637_vm1  ;;  %1881 = vmatpush3.bf16.msk.msra.mxu0 %vm2992_vm15, %v2208_v25 }
  0x5b   : > { %1967 = vmatmul.mubr.msk.bf16.vlgmr.msra.gmra.mrb[0].mxu1 %vm3651_vm8, %v1093_v17  ;;  %vm3070_vm9 = vmpackc.low %vm3652_vm4, %vm2872_vm2  ;;  %vm3659_vm2 = vnez %v3607_v45  ;;  %vm3663_vm4 = vnez %v3577_v41  ;;  %1882 = vmatprep.subr.msk.bf16.mxu0 %vm3055_vm14, %v2208_v25 }
  0x5c   : > { %1975 = vmatpush3.bf16.msk.msra.mxu1 %vm2938_vm11, %v2208_v25  ;;  %vm3658_vm3 = vmmov %vm3637_vm1  ;;  %vm313_vm1 = vcmp.eq.s32.totalorder %v2278_v2, %v305_v20  ;;  %v529_v2 = vsel %vm3663_vm4, %v3037_v12, 0  ;;  %v635_v41 = vsel %vm3070_vm9, %v2382_v33, 0  ;;  %v813_v31 = vsel %vm3070_vm9, %v2824_v46, 0 }
  0x5d   : > { %1970 = vmatprep.mubr.msk.bf16.mxu1 %vm3658_vm3, %v1094_v9  ;;  %vm3090_vm8 = vmpackc.low %vm3660_vm12, %vm3659_vm2  ;;  %1976 = vmatprep.subr.msk.bf16.mxu1 %vm2992_vm15, %v2208_v25  ;;  %vm3664_vm3 = vcmp.eq.s32.totalorder %v2589_v48, 0  ;;  %vm3665_vm12 = vcmp.eq.s32.totalorder %v2610_v37, 0 }
  0x5e   : > { %v3662_v18 = vsel %vm3090_vm8, 4294967295, %v3661_v18  ;;  %vm627_vm2 = vmand %vm3664_vm3, %vm3061_vm7  ;;  %1883 = vmatpush3.bf16.msk.msra.mxu0 %vm3055_vm14, %v2208_v25  ;;  %v1193_v61 = vsel %vm3090_vm8, %v2382_v33, 0  ;;  %v3679_v33 = vand.u32 1, %v2599_v59 }
  0x5f   : > { %vm628_vm11 = vmand %vm3665_vm12, %vm3076_vm13  ;;  %vm3678_vm12 = vcmp.eq.s32.totalorder %v2589_v48, 1 }
  0x60   : > { %vm3114_vm5 = vmpackc.low %vm314_vm6, %vm313_vm1  ;;  %1977 = vmatpush3.bf16.msk.msra.mxu1 %vm2992_vm15, %v2208_v25  ;;  %vm3670_vm1 = vcmask 523264   ;;  %vm3671_vm6 = vnez %v3579_v14 }
  0x61   : > { %vm3125_vm4 = vmpackc.low %vm3024_vm10, %vm3008_vm0  ;;  %1875 = vmatmul.mubr.msk.bf16.gmra.mrb[4].mxu0 %vm3670_vm1, %v529_v2  ;;  %v1095_v49 = vsel %vm3671_vm6, %v3037_v12, 0  ;;  %1978 = vmatprep.subr.msk.bf16.mxu1 %vm3055_vm14, %v2208_v25  ;;  %vm3151_vm10 = vcmp.eq.s32.totalorder %v3674_v26, 1  ;;  %vm3682_vm6 = vcmp.eq.s32.totalorder %v2610_v37, 1 }
  0x62   : > { %v3669_v19 = vsel %vm3125_vm4, 4294967295, %v3668_v19  ;;  %vm3145_vm0 = vmpackc.low %vm628_vm11, %vm627_vm2  ;;  %1884 = vmatprep.subr.msk.bf16.mxu0 %vm3114_vm5, %v2208_v25  ;;  %vm3165_vm2 = vcmp.eq.s32.totalorder %v3679_v33, 1  ;;  %v1194_v37 = vsel %vm3125_vm4, %v2466_v50, 0 }
  0x63   : > { %vm3677_vm3 = vmmov %vm3670_vm1  ;;  %1971 = vmatmul.mubr.msk.bf16.gmra.mrb[4].mxu1 %vm3670_vm1, %v1095_v49  ;;  %1885 = vmatpush3.bf16.msk.msra.mxu0 %vm3114_vm5, %v2208_v25  ;;  %v637_v59 = vsel %vm3145_vm0, %v2556_v35, 0  ;;  %v726_v11 = vsel %vm3145_vm0, %v2658_v58, 0 }
  0x64   : > { %1886 = vmatprep.mubr.msk.bf16.mxu0 %vm3677_vm3, %v635_v41  ;;  %vm1185_vm11 = vmand %vm3678_vm12, %vm3061_vm7  ;;  %1979 = vmatpush3.bf16.msk.msra.mxu1 %vm3055_vm14, %v2208_v25  ;;  %vm3684_vm7 = vcmp.eq.s32.totalorder %v2660_v23, 0 }
  0x65   : > { %vm1186_vm8 = vmand %vm3682_vm6, %vm3076_vm13  ;;  %1980 = vmatprep.subr.msk.bf16.mxu1 %vm3114_vm5, %v2208_v25  ;;  %vm3685_vm13 = vnez %v3644_v51 }
  0x66   : > { %vm3683_vm3 = vmmov %vm3670_vm1  ;;  %v636_v48 = vsel %vm3685_vm13, %v2466_v50, 0  ;;  %vm3686_vm1 = vcmp.eq.s32.totalorder %v2671_v43, 0  ;;  %vm3690_vm13 = vcmask 523264  }
  0x67   : > { %1982 = vmatprep.mubr.msk.bf16.mxu1 %vm3683_vm3, %v1193_v61  ;;  %vm629_vm12 = vmand %vm3684_vm7, %vm3151_vm10  ;;  %vm3687_vm3 = vnez %v3619_v24 }
  0x68   : > { %vm630_vm6 = vmand %vm3686_vm1, %vm3165_vm2  ;;  %1894 = vmatprep.subr.msk.bf16.mxu0 %vm3687_vm3, %v2208_v25  ;;  %1981 = vmatpush3.bf16.msk.msra.mxu1 %vm3114_vm5, %v2208_v25 }
  0x69   : > { %vm3198_vm7 = vmpackc.low %vm1186_vm8, %vm1185_vm11  ;;  %1887 = vmatmul.mubr.msk.bf16.vlgmr.msra.gmra.mrb[0].mxu0 %vm3690_vm13, %v636_v48  ;;  %1990 = vmatprep.subr.msk.bf16.mxu1 %vm3687_vm3, %v2208_v25  ;;  %vm3693_vm8 = vcmp.eq.s32.totalorder %v2660_v23, 1 }
  0x6a   : > { %v3689_v57 = vsel %vm3198_vm7, 4294967295, %v3688_v57  ;;  %vm3212_vm1 = vmpackc.low %vm630_vm6, %vm629_vm12  ;;  %1895 = vmatpush3.bf16.msk.msra.mxu0 %vm3687_vm3, %v2208_v25  ;;  %v1195_v62 = vsel %vm3198_vm7, %v2556_v35, 0 }
  0x6b   : > { %vm1187_vm11 = vmand %vm3693_vm8, %vm3151_vm10  ;;  %1896 = vmatprep.subr.msk.bf16.mxu0 %vm2992_vm15, %v2208_v25  ;;  %v638_v50 = vsel %vm3212_vm1, %v2601_v21, 0 }
  0x6c   : > { %vm3694_vm12 = vmmov %vm3690_vm13  ;;  %vm3695_vm13 = vcmp.eq.s32.totalorder %v2671_v43, 1  ;;  %v724_v43 = vsel %vm3070_vm9, %v2478_v52, 0 }
  0x6d   : > { %1890 = vmatprep.mubr.msk.bf16.mxu0 %vm3694_vm12, %v637_v59  ;;  %vm1188_vm6 = vmand %vm3695_vm13, %vm3165_vm2  ;;  %vm3700_vm2 = vnez %v3662_v18 }
  0x6e   : > { %vm3696_vm4 = vmmov %vm3694_vm12  ;;  %1897 = vmatpush3.bf16.msk.msra.mxu0 %vm2992_vm15, %v2208_v25  ;;  %v1282_v45 = vsel %vm3700_vm2, %v2478_v52, 0  ;;  %v3704_v52 = vld [vmem:[#allocation5_spill] sm:$0xff]  ;;  %vm3705_vm12 = vnez %v3644_v51  ;;  %v1371_v1 = vsel %vm3700_vm2, %v2824_v46, 0  ;;  %v815_v46 = vsel %vm3145_vm0, %v2942_v30, 0 }
  0x6f   : > { %1983 = vmatmul.mubr.msk.bf16.vlgmr.msra.gmra.mrb[0].mxu1 %vm3696_vm4, %v1194_v37  ;;  %vm3697_vm7 = vmmov %vm3696_vm4  ;;  %1898 = vmatprep.subr.msk.bf16.mxu0 %vm3055_vm14, %v2208_v25 }
  0x70   : > { %1991 = vmatpush3.bf16.msk.msra.mxu1 %vm3687_vm3, %v2208_v25  ;;  %1986 = vmatprep.mubr.msk.bf16.mxu1 %vm3697_vm7, %v1195_v62  ;;  %vm3251_vm10 = vmpackc.low %vm1188_vm6, %vm1187_vm11  ;;  %vm3707_vm6 = vnez %v3669_v19 }
  0x71   : > { %1992 = vmatprep.subr.msk.bf16.mxu1 %vm2992_vm15, %v2208_v25  ;;  %1891 = vmatmul.mubr.msk.bf16.gmra.mrb[4].mxu0 %vm3696_vm4, %v638_v50  ;;  %v1196_v23 = vsel %vm3251_vm10, %v2601_v21, 0  ;;  %vm3701_vm7 = vmmov %vm3696_vm4  ;;  %v725_v21 = vsel %vm3705_vm12, %v3704_v52, 0  ;;  %v1283_v56 = vsel %vm3707_vm6, %v3704_v52, 0  ;;  %v1285_v24 = vsel %vm3251_vm10, %v2731_v44, 0 }
  0x72   : > { %1899 = vmatpush3.bf16.msk.msra.mxu0 %vm3055_vm14, %v2208_v25  ;;  %1902 = vmatprep.mubr.msk.bf16.mxu0 %vm3701_vm7, %v724_v43  ;;  %vm3702_vm8 = vmmov %vm3696_vm4  ;;  %v1372_v4 = vsel %vm3707_vm6, %v2896_v13, 0 }
  0x73   : > { %1900 = vmatprep.subr.msk.bf16.mxu0 %vm3114_vm5, %v2208_v25  ;;  %vm3703_vm11 = vmmov %vm3696_vm4 }
  0x74   : > { %1993 = vmatpush3.bf16.msk.msra.mxu1 %vm2992_vm15, %v2208_v25  ;;  %vm3706_vm13 = vmmov %vm3696_vm4  ;;  %vm3708_vm4 = vnez %v3689_v57 }
  0x75   : > { %1994 = vmatprep.subr.msk.bf16.mxu1 %vm3055_vm14, %v2208_v25  ;;  %v1284_v0 = vsel %vm3708_vm4, %v2658_v58, 0  ;;  %v727_v58 = vsel %vm3212_vm1, %v2731_v44, 0  ;;  %v814_v44 = vsel %vm3705_vm12, %v2896_v13, 0  ;;  %v1373_v36 = vsel %vm3708_vm4, %v2942_v30, 0 }
  0x76   : > { %1901 = vmatpush3.bf16.msk.msra.mxu0 %vm3114_vm5, %v2208_v25  ;;  %v1374_v13 = vsel %vm3251_vm10, %v3037_v12, 0 }
  0x77   : > { %1987 = vmatmul.mubr.msk.bf16.gmra.mrb[4].mxu1 %vm3702_vm8, %v1196_v23  ;;  %1910 = vmatprep.subr.msk.bf16.mxu0 %vm3687_vm3, %v2208_v25  ;;  %vm3709_vm8 = vmmov %vm3701_vm7 }
  0x78   : > { %1995 = vmatpush3.bf16.msk.msra.mxu1 %vm3055_vm14, %v2208_v25  ;;  %1998 = vmatprep.mubr.msk.bf16.mxu1 %vm3703_vm11, %v1282_v45  ;;  %vm3710_vm11 = vmmov %vm3701_vm7 }
  0x79   : > { %1996 = vmatprep.subr.msk.bf16.mxu1 %vm3114_vm5, %v2208_v25  ;;  %1903 = vmatmul.mubr.msk.bf16.vlgmr.msra.gmra.mrb[0].mxu0 %vm3706_vm13, %v725_v21 }
  0x7a   : > { %1911 = vmatpush3.bf16.msk.msra.mxu0 %vm3687_vm3, %v2208_v25  ;;  %1906 = vmatprep.mubr.msk.bf16.mxu0 %vm3701_vm7, %v726_v11 }
  0x7b   : > { %1912 = vmatprep.subr.msk.bf16.mxu0 %vm2992_vm15, %v2208_v25 }
  0x7c   : > { %1997 = vmatpush3.bf16.msk.msra.mxu1 %vm3114_vm5, %v2208_v25 }
  0x7d   : > { %2006 = vmatprep.subr.msk.bf16.mxu1 %vm3687_vm3, %v2208_v25 }
  0x7e   : > { %1913 = vmatpush3.bf16.msk.msra.mxu0 %vm2992_vm15, %v2208_v25 }
  0x7f   : > { %1999 = vmatmul.mubr.msk.bf16.vlgmr.msra.gmra.mrb[0].mxu1 %vm3709_vm8, %v1283_v56  ;;  %1914 = vmatprep.subr.msk.bf16.mxu0 %vm3055_vm14, %v2208_v25 }
  0x80   : > { %2007 = vmatpush3.bf16.msk.msra.mxu1 %vm3687_vm3, %v2208_v25  ;;  %2002 = vmatprep.mubr.msk.bf16.mxu1 %vm3710_vm11, %v1284_v0  ;;  %vm3711_vm3 = vmmov %vm3701_vm7 }
  0x81   : > { %2008 = vmatprep.subr.msk.bf16.mxu1 %vm2992_vm15, %v2208_v25  ;;  %1907 = vmatmul.mubr.msk.bf16.gmra.mrb[4].mxu0 %vm3711_vm3, %v727_v58  ;;  %vm3713_vm9 = vmmov %vm3711_vm3 }
  0x82   : > { %1915 = vmatpush3.bf16.msk.msra.mxu0 %vm3055_vm14, %v2208_v25  ;;  %vm3714_vm13 = vmmov %vm3711_vm3 }
  0x83   : > { %1916 = vmatprep.subr.msk.bf16.mxu0 %vm3114_vm5, %v2208_v25  ;;  %vm3716_vm2 = vmmov %vm3711_vm3 }
  0x84   : > { %2009 = vmatpush3.bf16.msk.msra.mxu1 %vm2992_vm15, %v2208_v25  ;;  %vm3712_vm15 = vmmov %vm3711_vm3 }
  0x85   : > { %2010 = vmatprep.subr.msk.bf16.mxu1 %vm3055_vm14, %v2208_v25  ;;  %1918 = vmatprep.mubr.msk.bf16.mxu0 %vm3712_vm15, %v813_v31  ;;  %vm3717_vm12 = vmmov %vm3716_vm2 }
  0x86   : > { %1917 = vmatpush3.bf16.msk.msra.mxu0 %vm3114_vm5, %v2208_v25  ;;  %vm3718_vm7 = vmmov %vm3716_vm2 }
  0x87   : > { %2003 = vmatmul.mubr.msk.bf16.gmra.mrb[4].mxu1 %vm3713_vm9, %v1285_v24  ;;  %vm3720_vm0 = vmmov %vm3716_vm2 }
  0x88   : > { %2011 = vmatpush3.bf16.msk.msra.mxu1 %vm3055_vm14, %v2208_v25  ;;  %2014 = vmatprep.mubr.msk.bf16.mxu1 %vm3714_vm13, %v1371_v1  ;;  %vm3715_vm14 = vmmov %vm3711_vm3 }
  0x89   : > { %2012 = vmatprep.subr.msk.bf16.mxu1 %vm3114_vm5, %v2208_v25  ;;  %1919 = vmatmul.mubr.msk.bf16.vlgmr.msra.gmra.mrb[0].mxu0 %vm3715_vm14, %v814_v44 }
  0x8a   : > { %1922 = vmatprep.mubr.msk.bf16.mxu0 %vm3716_vm2, %v815_v46 }
  0x8c   : > { %2013 = vmatpush3.bf16.msk.msra.mxu1 %vm3114_vm5, %v2208_v25  ;;  %v816_v25 = vsel %vm3212_vm1, %v3037_v12, 0  ;;  %vm3719_vm5 = vmmov %vm3716_vm2 }
  0x8f   : > { %2015 = vmatmul.mubr.msk.bf16.vlgmr.msra.gmra.mrb[0].mxu1 %vm3717_vm12, %v1372_v4 }
  0x90   : > { %2018 = vmatprep.mubr.msk.bf16.mxu1 %vm3718_vm7, %v1373_v36 }
  0x91   : > { %1923 = vmatmul.mubr.msk.bf16.gmra.mrb[4].mxu0 %vm3719_vm5, %v816_v25 }
  0x97   : > { %2019 = vmatmul.mubr.msk.bf16.gmra.mrb[4].mxu1 %vm3720_vm0, %v1374_v13 }
 0x15c   : > { %v1920_v30 = vpop.f32.mrb[0].mxu0 }
 0x15d   : > { %904 = vst [vmem:[%s3402_s3 + $0x20] sm:$0xff] %v1920_v30  ;;  %v863_v3 = vpop.f32.mrb[1].mxu0 }
 0x15e   : > { %902 = vst [vmem:[%s3402_s3] sm:$0xff] %v863_v3  ;;  %v1921_v47 = vpop.f32.mrb[2].mxu0 }
 0x15f   : > { %905 = vst [vmem:[%s3402_s3 + $0x30] sm:$0xff] %v1921_v47  ;;  %v866_v8 = vpop.f32.mrb[3].mxu0 }
 0x160   : > { %903 = vst [vmem:[%s3402_s3 + $0x10] sm:$0xff] %v866_v8 }
 0x162   : > { %v2016_v7 = vpop.f32.mrb[0].mxu1 }
 0x163   : > { %1462 = vst [vmem:[%s3402_s3 + $0x28] sm:$0xff] %v2016_v7  ;;  %v1421_v34 = vpop.f32.mrb[1].mxu1 }
 0x164   : > { %1460 = vst [vmem:[%s3402_s3 + $0x8] sm:$0xff] %v1421_v34  ;;  %v2017_v38 = vpop.f32.mrb[2].mxu1  ;;  %v1924_v39 = vpop.f32.mrb[4].mxu0 }
 0x165   : > { %1463 = vst [vmem:[%s3402_s3 + $0x38] sm:$0xff] %v2017_v38  ;;  %v1424_v27 = vpop.f32.mrb[3].mxu1  ;;  %908 = vst [vmem:[%s3402_s3 + $0x60] sm:$0xff] %v1924_v39  ;;  %v879_v54 = vpop.f32.mrb[5].mxu0 }
 0x166   : > { %1461 = vst [vmem:[%s3402_s3 + $0x18] sm:$0xff] %v1424_v27  ;;  %906 = vst [vmem:[%s3402_s3 + $0x40] sm:$0xff] %v879_v54  ;;  %v1925_v17 = vpop.f32.mrb[6].mxu0 }
 0x167   : > { %909 = vst [vmem:[%s3402_s3 + $0x70] sm:$0xff] %v1925_v17  ;;  %v882_v40 = vpop.f32.mrb[7].mxu0 }
 0x168   : > { %907 = vst [vmem:[%s3402_s3 + $0x50] sm:$0xff] %v882_v40 }
 0x16a   : > { %v2020_v15 = vpop.f32.mrb[4].mxu1 }
 0x16b   : > { %1466 = vst [vmem:[%s3402_s3 + $0x68] sm:$0xff] %v2020_v15  ;;  %v1437_v20 = vpop.f32.mrb[5].mxu1 }
 0x16c   : > { %1464 = vst [vmem:[%s3402_s3 + $0x48] sm:$0xff] %v1437_v20  ;;  %v2021_v16 = vpop.f32.mrb[6].mxu1 }
 0x16d   : > { %1467 = vst [vmem:[%s3402_s3 + $0x78] sm:$0xff] %v2021_v16  ;;  %v1440_v10 = vpop.f32.mrb[7].mxu1 }
 0x16e   : > { %1465 = vst [vmem:[%s3402_s3 + $0x58] sm:$0xff] %v1440_v10 }
 0x16f   : > { %2157 = shalt.err (!%p2154_p3)
}
 0x170   : > { %s2158_s22 = scalar_lea.hbm %s3422_s8, 2048  ;;  %s2162_s25 = scalar_lea.hbm %s3474_s2, 4096 }
 0x171   : > { %p2159_p4 = scmp.ne.s32.totalorder %s3422_s8, %s2158_s22  ;;  %p2163_p9 = scmp.lt.u32.totalorder %s3422_s8, %s3474_s2 }
 0x172   : > { %p2164_p10 = scmp.lt.u32.totalorder %s2162_s25, %s2158_s22  ;;  %p2166_p12 = scmp.lt.u32.totalorder %s2158_s22, %s3422_s8 }
 0x173   : > { %p2160_p7 = pnand %p2159_p4, %p2265_p5 }
 0x174   : > { %p2165_p11 = por %p2164_p10, %p2163_p9 }
 0x175   : > { %p2161_p8 = pneg %p2160_p7 }
 0x176   : > { %p2167_p13 = por %p2166_p12, %p2165_p11 }
 0x178   : > { %p2168_p0 = pnand %p2167_p13, %p2161_p8 }
 0x17a   : > { %2171 = shalt.err (!%p2168_p0)
}
 0x17b   : > { %s2210_s28 = smov 256   ;;  %s2211_s29 = smov 16  }
 0x17c   : > { %2102 = dma.vmem_to_hbm [thread:$0]  (%p2265_p5), %s3424_s5, 2048, %s3422_s8, %s3431_s13, %s2210_s28, %s2210_s28, %s2211_s29  }
 0x17d PF: > { %p2108_p1 = scmp.ge.s32.totalorder %s2206_s12, 2  ;;  %s1498_s30 = sand.u32 1, %s2194_s9  }
 0x17e   : > { %s1499_s3 = scalar_lea.sflag [#allocation3], %s1498_s30 }
 0x17f   : > { %p2105_p2 = pnand %p2108_p1, %p2269_p6 }
 0x181   : > { %2189 = dma.done.wait (!%p2105_p2), %s1499_s3, 2048  }
 0x182   : > { %2191 = vsyncadd (!%p2105_p2), %s1499_s3, 4294965248  ;;  %p12_p3 = scmp.ge.s32.totalorder %s2252_s15, 4   ;;  %s3721_s9 = smov %s2198_s10 }
 0x183   : > { %s3722_s10 = smov %s2202_s11  ;;  %s3723_s11 = smov %s2263_s18 }
 0x184   : > { %s3724_s12 = smov %s2252_s15  ;;  %14 = sbr.rel (!%p12_p3) target bundleno = 3 (0x3), region = 66 }
 0x18b   :  { %1504 = vsyncpa [#allocation3], 1 }
 0x18c   :  { %1506 = vsyncpa [#allocation3 + $0x1], 1 }

</bundles_post_ra>
